<compile_context>
chip_gen: v6e
topology: v6e:2x2x1
jax: 0.10.0
libtpu: 0.0.40
codegen_flags: <defaults>
</compile_context>

<pallas_src>
import jax
import jax.numpy as jnp
from jax.experimental import pallas as pl
from jax.experimental.pallas import tpu as pltpu

POS_WEIGHT = 1.5       # BCEWithLogitsLoss(pos_weight=1.5)
SMOOTH = 1.0           # MultiClassDiceLoss default smooth
ALPHA = 0.5            # ComboLoss alpha
FACTOR = 0.3           # ModComboLoss factor
BETA = 0.1             # SmoothL1 beta
PAD_LOGIT = -1.0e4     # pad logit -> sigmoid == 0, BCE contribution == 0 exactly
MAX_TR = 2048          # max rows (of 128 lanes) per block: 1 MiB f32 per input block


def _ceil_div(a, b):
    return -(-a // b)


def _round_up(a, b):
    return _ceil_div(a, b) * b


def _make_seg_kernel(weighted: bool):
    """Per-batch BCE-with-logits + binary-dice partial sums, plus coords SmoothL1.

    Grid = (batch, spatial_chunk). Outputs are lane-dense (8,128) accumulators
    resident across the chunk (reduction) axis.
    """

    def kernel(*refs):
        if weighted:
            (x_ref, y_ref, w_ref, cp_ref, ct_ref,
             bce_ref, inter_ref, union_ref, sl1_ref) = refs
        else:
            (x_ref, y_ref, cp_ref, ct_ref,
             bce_ref, inter_ref, union_ref, sl1_ref) = refs

        c = pl.program_id(1)

        @pl.when(c == 0)
        def _init():
            bce_ref[...] = jnp.zeros_like(bce_ref)
            inter_ref[...] = jnp.zeros_like(inter_ref)
            union_ref[...] = jnp.zeros_like(union_ref)
            # SmoothL1 lane-partials for the (tiny, resident) coords block.
            d = cp_ref[...].astype(jnp.float32) - ct_ref[...].astype(jnp.float32)
            ad = jnp.abs(d)
            sl1 = jnp.where(ad < BETA, (0.5 / BETA) * (d * d), ad - 0.5 * BETA)
            sl1_ref[...] = jnp.sum(sl1, axis=0, keepdims=True)

        x = x_ref[...].astype(jnp.float32)   # (TR, 128) logits
        y = y_ref[...].astype(jnp.float32)   # (TR, 128) binary targets

        # Shared e = exp(-|x|): both sigmoid(x) and softplus(-x) from one exp.
        e = jnp.exp(-jnp.abs(x))
        conf = jnp.where(x >= 0.0, 1.0, e) / (1.0 + e)           # sigmoid(x)
        sp_neg = jnp.maximum(-x, 0.0) + jnp.log(1.0 + e)         # softplus(-x), stable
        # BCEWithLogits with pos_weight p: (1-y)*x + (1 + (p-1)*y)*softplus(-x)
        bce = (1.0 - y) * x + (1.0 + (POS_WEIGHT - 1.0) * y) * sp_neg

        tr = x.shape[0]

        def lanes(v):
            # (TR,128) -> (8,128) lane-wise partials via pure vreg adds (no XLU).
            return jnp.sum(v.reshape(tr // 8, 8, 128), axis=0)

        if weighted:
            w = w_ref[...].astype(jnp.float32)
            inter_ref[...] += lanes(w * conf * y)
            union_ref[...] += lanes(w * (conf + y))
        else:
            inter_ref[...] += lanes(conf * y)
            union_ref[...] += lanes(conf + y)
        bce_ref[...] += lanes(bce)

    return kernel


_seg_kernel_weighted = _make_seg_kernel(True)
_seg_kernel_unweighted = _make_seg_kernel(False)


def _seg_call(x3, y3, w3, cp2, ct2, tr):
    """x3/y3/[w3]: (N, R_pad, 128); cp2/ct2: (Mr, 128). Returns 4 partial-sum arrays."""
    n, r_pad, _ = x3.shape
    n_chunks = r_pad // tr
    weighted = w3 is not None
    kernel = _seg_kernel_weighted if weighted else _seg_kernel_unweighted

    tile_spec = pl.BlockSpec((None, tr, 128), lambda b, c: (b, c, 0))
    coord_spec = pl.BlockSpec(cp2.shape, lambda b, c: (0, 0))      # resident, fetched once
    acc_spec = pl.BlockSpec((None, 8, 128), lambda b, c: (b, 0, 0))
    sl1_spec = pl.BlockSpec((None, 1, 128), lambda b, c: (b, 0, 0))

    acc_sds = jax.ShapeDtypeStruct((n, 8, 128), jnp.float32)
    sl1_sds = jax.ShapeDtypeStruct((n, 1, 128), jnp.float32)

    in_specs = [tile_spec, tile_spec] + ([tile_spec] if weighted else []) \
        + [coord_spec, coord_spec]
    args = [x3, y3] + ([w3] if weighted else []) + [cp2, ct2]

    in_block_bytes = tr * 128 * (x3.dtype.itemsize + y3.dtype.itemsize
                                 + (w3.dtype.itemsize if weighted else 0))
    vmem_limit = int(min(max(10 * in_block_bytes, 16 << 20), 48 << 20))

    return pl.pallas_call(
        kernel,
        grid=(n, n_chunks),
        in_specs=in_specs,
        out_specs=[acc_spec, acc_spec, acc_spec, sl1_spec],
        out_shape=[acc_sds, acc_sds, acc_sds, sl1_sds],
        compiler_params=pltpu.CompilerParams(
            dimension_semantics=("parallel", "arbitrary"),
            vmem_limit_bytes=vmem_limit,
        ),
    )(*args)


def mod_combo_loss(outputs, targets, weights=None):
    """outputs: {'logits': (N,1,H,W) or list of them, 'coords': (...)}
       targets: {'labels': (N,H,W), 'corner_coordinates': same shape as coords}
       weights: optional (N,H,W); None uses the weights-free kernel (implicit ones).
    """
    logits = outputs["logits"]
    if not isinstance(logits, (list, tuple)):
        logits = [logits]
    labels = targets["labels"]
    n, h, w_dim = labels.shape
    s = h * w_dim

    # Spatial tiling: rows of 128 lanes; row-tile TR (multiple of 8, <= MAX_TR)
    # chosen to minimize padding while keeping ~1 MiB f32 per input block.
    r = _ceil_div(s, 128)
    r8 = _round_up(r, 8)
    n_chunks = _ceil_div(r8, MAX_TR)
    tr = _round_up(_ceil_div(r8, n_chunks), 8)
    r_pad = tr * n_chunks
    s_pad = r_pad * 128

    def to_rows(a, pad_val):
        a2 = a.reshape(n, s)                      # native dtype; cast happens in-kernel
        if s_pad != s:
            a2 = jnp.pad(a2, ((0, 0), (0, s_pad - s)), constant_values=pad_val)
        return a2.reshape(n, r_pad, 128)

    y3 = to_rows(labels, 0)
    w3 = to_rows(weights, 0) if weights is not None else None

    # Coords flattened and padded to a multiple of 128 lanes (padded pairs equal -> 0 loss).
    cp = outputs["coords"].reshape(-1)
    ct = targets["corner_coordinates"].reshape(-1)
    m = cp.shape[0]
    m_pad = _round_up(max(m, 1), 128)
    if m_pad != m:
        cp = jnp.pad(cp, (0, m_pad - m))
        ct = jnp.pad(ct, (0, m_pad - m))
    cp2 = cp.reshape(m_pad // 128, 128)
    ct2 = ct.reshape(m_pad // 128, 128)

    ce_vals, dice_vals = [], []
    coords_sum = None
    for lg in logits:
        x3 = to_rows(lg, PAD_LOGIT)
        bce_p, inter_p, union_p, sl1_p = _seg_call(x3, y3, w3, cp2, ct2, tr)
        ce_vals.append(jnp.sum(bce_p) / (n * s))                       # BCE mean
        inter = jnp.sum(inter_p, axis=(1, 2))                          # (N,)
        union = jnp.sum(union_p, axis=(1, 2))                          # (N,)
        dice_vals.append(jnp.mean(1.0 - (2.0 * inter + SMOOTH) / (union + SMOOTH)))
        if coords_sum is None:
            coords_sum = jnp.sum(sl1_p[0])

    ce_loss = jnp.mean(jnp.stack(ce_vals))
    dice_loss = jnp.mean(jnp.stack(dice_vals))
    logits_loss = ALPHA * ce_loss + dice_loss
    coords_loss = coords_sum / m
    loss = FACTOR * logits_loss + (1.0 - FACTOR) * coords_loss
    return loss, logits_loss, coords_loss


def _reference(outputs, targets, weights):
    """Pure-JAX reference of the same math (for a sanity check)."""
    lg = outputs["logits"]
    labels = targets["labels"]
    n = labels.shape[0]
    x = lg.reshape(n, -1).astype(jnp.float32)
    y = labels.reshape(n, -1).astype(jnp.float32)
    wt = weights.reshape(n, -1).astype(jnp.float32)
    p = jax.nn.sigmoid(x)
    bce = jnp.mean((1.0 - y) * x + (1.0 + (POS_WEIGHT - 1.0) * y) * jax.nn.softplus(-x))
    inter = jnp.sum(p * y * wt, axis=-1)
    union = jnp.sum(wt * p, axis=-1) + jnp.sum(wt * y, axis=-1)
    dice = jnp.mean(1.0 - (2.0 * inter + SMOOTH) / (union + SMOOTH))
    ll = ALPHA * bce + dice
    d = outputs["coords"].astype(jnp.float32) - targets["corner_coordinates"].astype(jnp.float32)
    ad = jnp.abs(d)
    cl = jnp.mean(jnp.where(ad < BETA, 0.5 * d * d / BETA, ad - 0.5 * BETA))
    return FACTOR * ll + (1.0 - FACTOR) * cl, ll, cl


if __name__ == "__main__":
    key = jax.random.PRNGKey(0)
    k1, k2, k3, k4, k5 = jax.random.split(key, 5)

    # Case 1: weighted path, S a multiple of 128.
    N, C, H, W = 2, 1, 16, 16       # binary segmentation (number_of_classes == 1)
    K = 4                           # 4 corner points, (x, y)
    logits = jax.random.normal(k1, (N, C, H, W), dtype=jnp.float32)
    labels = jax.random.bernoulli(k2, 0.5, (N, H, W)).astype(jnp.float32)
    wts = jax.random.uniform(k5, (N, H, W), minval=0.5, maxval=1.5, dtype=jnp.float32)
    coords_pred = jax.random.normal(k3, (N, K, 2), dtype=jnp.float32)
    coords_tgt = coords_pred + 0.05 * jax.random.normal(k4, (N, K, 2), dtype=jnp.float32)

    outputs = {"logits": logits, "coords": coords_pred}
    tgts = {"labels": labels, "corner_coordinates": coords_tgt}

    res = mod_combo_loss(outputs, tgts, wts)
    jax.block_until_ready(res)
    ref = _reference(outputs, tgts, wts)
    for a, b in zip(res, ref):
        assert jnp.allclose(a, b, atol=1e-4, rtol=1e-4), (a, b)

    # Case 2: weights=None (weights-free kernel) and S not a multiple of 128 (padding path).
    N2, H2, W2, K2 = 3, 10, 13, 4
    kk = jax.random.split(k5, 4)
    logits2 = jax.random.normal(kk[0], (N2, 1, H2, W2), dtype=jnp.float32)
    labels2 = jax.random.bernoulli(kk[1], 0.4, (N2, H2, W2)).astype(jnp.float32)
    cpred2 = jax.random.normal(kk[2], (N2, K2, 2), dtype=jnp.float32)
    ctgt2 = cpred2 + 0.2 * jax.random.normal(kk[3], (N2, K2, 2), dtype=jnp.float32)
    outputs2 = {"logits": logits2, "coords": cpred2}
    tgts2 = {"labels": labels2, "corner_coordinates": ctgt2}

    res2 = mod_combo_loss(outputs2, tgts2, None)
    jax.block_until_ready(res2)
    ref2 = _reference(outputs2, tgts2, jnp.ones((N2, H2, W2), jnp.float32))
    for a, b in zip(res2, ref2):
        assert jnp.allclose(a, b, atol=1e-4, rtol=1e-4), (a, b)

    print("KERNEL_OK")
</pallas_src>

<mosaic_0001>
module attributes {stable_mosaic.version = 11 : i64} {
  func.func @kernel(%arg0: i32, %arg1: i32, %arg2: memref<1x8x128xf32, #tpu.memory_space<vmem>>, %arg3: memref<1x8x128xf32, #tpu.memory_space<vmem>>, %arg4: memref<1x8x128xf32, #tpu.memory_space<vmem>>, %arg5: memref<1x128xf32, #tpu.memory_space<vmem>>, %arg6: memref<1x128xf32, #tpu.memory_space<vmem>>, %arg7: memref<1x8x128xf32, #tpu.memory_space<vmem>>, %arg8: memref<1x8x128xf32, #tpu.memory_space<vmem>>, %arg9: memref<1x8x128xf32, #tpu.memory_space<vmem>>, %arg10: memref<1x1x128xf32, #tpu.memory_space<vmem>>) attributes {dimension_semantics = [#tpu.dimension_semantics<parallel>, #tpu.dimension_semantics<arbitrary>], iteration_bounds = array<i64: 2, 1>, scalar_prefetch = 0 : i64, scratch_operands = 0 : i64, tpu.core_type = #tpu.core_type<tc>, window_params = [{transform_indices = @transform_0, window_bounds = array<i64: 1, 8, 128>}, {transform_indices = @transform_1, window_bounds = array<i64: 1, 8, 128>}, {transform_indices = @transform_2, window_bounds = array<i64: 1, 8, 128>}, {pipeline_mode = #tpu.pipeline_mode<synchronous>, transform_indices = @transform_3, window_bounds = array<i64: 1, 128>}, {pipeline_mode = #tpu.pipeline_mode<synchronous>, transform_indices = @transform_4, window_bounds = array<i64: 1, 128>}, {transform_indices = @transform_5, window_bounds = array<i64: 1, 8, 128>}, {transform_indices = @transform_6, window_bounds = array<i64: 1, 8, 128>}, {transform_indices = @transform_7, window_bounds = array<i64: 1, 8, 128>}, {transform_indices = @transform_8, window_bounds = array<i64: 1, 1, 128>}]} {
    %c0_i32 = arith.constant 0 : i32
    %0 = arith.cmpi eq, %arg1, %c0_i32 : i32
    %1 = arith.extui %0 : i1 to i32
    %c0_i32_0 = arith.constant 0 : i32
    %2 = arith.cmpi ne, %1, %c0_i32_0 : i32
    scf.if %2 {
      %cst_39 = arith.constant 0.000000e+00 : f32
      %65 = vector.broadcast %cst_39 : f32 to vector<8x128xf32>
      %c0_40 = arith.constant 0 : index
      %c0_41 = arith.constant 0 : index
      %c0_42 = arith.constant 0 : index
      %66 = vector.load %arg7[%c0_40, %c0_41, %c0_42] : memref<1x8x128xf32, #tpu.memory_space<vmem>>, vector<1x8x128xf32>
      %67 = vector.shape_cast %66 : vector<1x8x128xf32> to vector<8x128xf32>
      %68 = vector.shape_cast %65 : vector<8x128xf32> to vector<1x8x128xf32>
      tpu.vector_store %arg7[%c0_40, %c0_41, %c0_42], %68 {strides = array<i32>} : memref<1x8x128xf32, #tpu.memory_space<vmem>>, vector<1x8x128xf32>,
      %cst_43 = arith.constant 0.000000e+00 : f32
      %69 = vector.broadcast %cst_43 : f32 to vector<8x128xf32>
      %c0_44 = arith.constant 0 : index
      %c0_45 = arith.constant 0 : index
      %c0_46 = arith.constant 0 : index
      %70 = vector.load %arg8[%c0_44, %c0_45, %c0_46] : memref<1x8x128xf32, #tpu.memory_space<vmem>>, vector<1x8x128xf32>
      %71 = vector.shape_cast %70 : vector<1x8x128xf32> to vector<8x128xf32>
      %72 = vector.shape_cast %69 : vector<8x128xf32> to vector<1x8x128xf32>
      tpu.vector_store %arg8[%c0_44, %c0_45, %c0_46], %72 {strides = array<i32>} : memref<1x8x128xf32, #tpu.memory_space<vmem>>, vector<1x8x128xf32>,
      %cst_47 = arith.constant 0.000000e+00 : f32
      %73 = vector.broadcast %cst_47 : f32 to vector<8x128xf32>
      %c0_48 = arith.constant 0 : index
      %c0_49 = arith.constant 0 : index
      %c0_50 = arith.constant 0 : index
      %74 = vector.load %arg9[%c0_48, %c0_49, %c0_50] : memref<1x8x128xf32, #tpu.memory_space<vmem>>, vector<1x8x128xf32>
      %75 = vector.shape_cast %74 : vector<1x8x128xf32> to vector<8x128xf32>
      %76 = vector.shape_cast %73 : vector<8x128xf32> to vector<1x8x128xf32>
      tpu.vector_store %arg9[%c0_48, %c0_49, %c0_50], %76 {strides = array<i32>} : memref<1x8x128xf32, #tpu.memory_space<vmem>>, vector<1x8x128xf32>,
      %c0_51 = arith.constant 0 : index
      %c0_52 = arith.constant 0 : index
      %77 = vector.load %arg5[%c0_51, %c0_52] : memref<1x128xf32, #tpu.memory_space<vmem>>, vector<1x128xf32>
      %c0_53 = arith.constant 0 : index
      %c0_54 = arith.constant 0 : index
      %78 = vector.load %arg6[%c0_53, %c0_54] : memref<1x128xf32, #tpu.memory_space<vmem>>, vector<1x128xf32>
      %79 = arith.subf %77, %78 : vector<1x128xf32>
      %80 = math.absf %79 : vector<1x128xf32>
      %cst_55 = arith.constant 1.000000e-01 : f32
      %81 = vector.broadcast %cst_55 : f32 to vector<1x128xf32>
      %82 = arith.cmpf olt, %80, %81 : vector<1x128xf32>
      %83 = arith.mulf %79, %79 : vector<1x128xf32>
      %cst_56 = arith.constant 5.000000e+00 : f32
      %84 = vector.broadcast %cst_56 : f32 to vector<1x128xf32>
      %85 = arith.mulf %84, %83 : vector<1x128xf32>
      %cst_57 = arith.constant 5.000000e-02 : f32
      %86 = vector.broadcast %cst_57 : f32 to vector<1x128xf32>
      %87 = arith.subf %80, %86 : vector<1x128xf32>
      %88 = arith.select %82, %85, %87 : vector<1x128xi1>, vector<1x128xf32>
      %cst_58 = arith.constant dense<0.000000e+00> : vector<128xf32>
      %89 = vector.multi_reduction <add>, %88, %cst_58 [0] : vector<1x128xf32> to vector<128xf32>
      %90 = vector.shape_cast %89 : vector<128xf32> to vector<1x128xf32>
      %c0_59 = arith.constant 0 : index
      %c0_60 = arith.constant 0 : index
      %c0_61 = arith.constant 0 : index
      %91 = vector.load %arg10[%c0_59, %c0_60, %c0_61] : memref<1x1x128xf32, #tpu.memory_space<vmem>>, vector<1x1x128xf32>
      %92 = vector.shape_cast %91 : vector<1x1x128xf32> to vector<1x128xf32>
      %93 = vector.shape_cast %90 : vector<1x128xf32> to vector<1x1x128xf32>
      tpu.vector_store %arg10[%c0_59, %c0_60, %c0_61], %93 {strides = array<i32>} : memref<1x1x128xf32, #tpu.memory_space<vmem>>, vector<1x1x128xf32>,
    } else {
    }
    %c0 = arith.constant 0 : index
    %c0_1 = arith.constant 0 : index
    %c0_2 = arith.constant 0 : index
    %3 = vector.load %arg2[%c0, %c0_1, %c0_2] : memref<1x8x128xf32, #tpu.memory_space<vmem>>, vector<1x8x128xf32>
    %4 = vector.shape_cast %3 : vector<1x8x128xf32> to vector<8x128xf32>
    %c0_3 = arith.constant 0 : index
    %c0_4 = arith.constant 0 : index
    %c0_5 = arith.constant 0 : index
    %5 = vector.load %arg3[%c0_3, %c0_4, %c0_5] : memref<1x8x128xf32, #tpu.memory_space<vmem>>, vector<1x8x128xf32>
    %6 = vector.shape_cast %5 : vector<1x8x128xf32> to vector<8x128xf32>
    %7 = math.absf %4 : vector<8x128xf32>
    %cst = arith.constant 0.000000e+00 : f32
    %8 = vector.broadcast %cst : f32 to vector<8x128xf32>
    %9 = arith.subf %8, %7 : vector<8x128xf32>
    %10 = math.exp %9 : vector<8x128xf32>
    %cst_6 = arith.constant 0.000000e+00 : f32
    %11 = vector.broadcast %cst_6 : f32 to vector<8x128xf32>
    %12 = arith.cmpf oge, %4, %11 : vector<8x128xf32>
    %cst_7 = arith.constant 1.000000e+00 : f32
    %13 = vector.broadcast %cst_7 : f32 to vector<8x128xf32>
    %14 = arith.select %12, %13, %10 : vector<8x128xi1>, vector<8x128xf32>
    %cst_8 = arith.constant 1.000000e+00 : f32
    %15 = vector.broadcast %cst_8 : f32 to vector<8x128xf32>
    %16 = arith.addf %15, %10 : vector<8x128xf32>
    %17 = arith.divf %14, %16 : vector<8x128xf32>
    %cst_9 = arith.constant 0.000000e+00 : f32
    %18 = vector.broadcast %cst_9 : f32 to vector<8x128xf32>
    %19 = arith.subf %18, %4 : vector<8x128xf32>
    %cst_10 = arith.constant 0.000000e+00 : f32
    %20 = vector.broadcast %cst_10 : f32 to vector<8x128xf32>
    %21 = arith.maximumf %19, %20 : vector<8x128xf32>
    %cst_11 = arith.constant 1.000000e+00 : f32
    %22 = vector.broadcast %cst_11 : f32 to vector<8x128xf32>
    %23 = arith.addf %22, %10 : vector<8x128xf32>
    %24 = math.log %23 : vector<8x128xf32>
    %25 = arith.addf %21, %24 : vector<8x128xf32>
    %cst_12 = arith.constant 1.000000e+00 : f32
    %26 = vector.broadcast %cst_12 : f32 to vector<8x128xf32>
    %27 = arith.subf %26, %6 : vector<8x128xf32>
    %28 = arith.mulf %27, %4 : vector<8x128xf32>
    %cst_13 = arith.constant 5.000000e-01 : f32
    %29 = vector.broadcast %cst_13 : f32 to vector<8x128xf32>
    %30 = arith.mulf %29, %6 : vector<8x128xf32>
    %cst_14 = arith.constant 1.000000e+00 : f32
    %31 = vector.broadcast %cst_14 : f32 to vector<8x128xf32>
    %32 = arith.addf %31, %30 : vector<8x128xf32>
    %33 = arith.mulf %32, %25 : vector<8x128xf32>
    %34 = arith.addf %28, %33 : vector<8x128xf32>
    %c0_15 = arith.constant 0 : index
    %c0_16 = arith.constant 0 : index
    %c0_17 = arith.constant 0 : index
    %35 = vector.load %arg4[%c0_15, %c0_16, %c0_17] : memref<1x8x128xf32, #tpu.memory_space<vmem>>, vector<1x8x128xf32>
    %36 = vector.shape_cast %35 : vector<1x8x128xf32> to vector<8x128xf32>
    %c0_18 = arith.constant 0 : index
    %c0_19 = arith.constant 0 : index
    %c0_20 = arith.constant 0 : index
    %37 = vector.load %arg8[%c0_18, %c0_19, %c0_20] : memref<1x8x128xf32, #tpu.memory_space<vmem>>, vector<1x8x128xf32>
    %38 = vector.shape_cast %37 : vector<1x8x128xf32> to vector<8x128xf32>
    %39 = arith.mulf %36, %17 : vector<8x128xf32>
    %40 = arith.mulf %39, %6 : vector<8x128xf32>
    %41 = vector.shape_cast %40 : vector<8x128xf32> to vector<1x8x128xf32>
    %cst_21 = arith.constant dense<0.000000e+00> : vector<8x128xf32>
    %42 = vector.multi_reduction <add>, %41, %cst_21 [0] : vector<1x8x128xf32> to vector<8x128xf32>
    %43 = arith.addf %38, %42 : vector<8x128xf32>
    %c0_22 = arith.constant 0 : index
    %c0_23 = arith.constant 0 : index
    %c0_24 = arith.constant 0 : index
    %44 = vector.load %arg8[%c0_22, %c0_23, %c0_24] : memref<1x8x128xf32, #tpu.memory_space<vmem>>, vector<1x8x128xf32>
    %45 = vector.shape_cast %44 : vector<1x8x128xf32> to vector<8x128xf32>
    %46 = vector.shape_cast %43 : vector<8x128xf32> to vector<1x8x128xf32>
    tpu.vector_store %arg8[%c0_22, %c0_23, %c0_24], %46 {strides = array<i32>} : memref<1x8x128xf32, #tpu.memory_space<vmem>>, vector<1x8x128xf32>,
    %c0_25 = arith.constant 0 : index
    %c0_26 = arith.constant 0 : index
    %c0_27 = arith.constant 0 : index
    %47 = vector.load %arg9[%c0_25, %c0_26, %c0_27] : memref<1x8x128xf32, #tpu.memory_space<vmem>>, vector<1x8x128xf32>
    %48 = vector.shape_cast %47 : vector<1x8x128xf32> to vector<8x128xf32>
    %49 = arith.addf %17, %6 : vector<8x128xf32>
    %50 = arith.mulf %36, %49 : vector<8x128xf32>
    %51 = vector.shape_cast %50 : vector<8x128xf32> to vector<1x8x128xf32>
    %cst_28 = arith.constant dense<0.000000e+00> : vector<8x128xf32>
    %52 = vector.multi_reduction <add>, %51, %cst_28 [0] : vector<1x8x128xf32> to vector<8x128xf32>
    %53 = arith.addf %48, %52 : vector<8x128xf32>
    %c0_29 = arith.constant 0 : index
    %c0_30 = arith.constant 0 : index
    %c0_31 = arith.constant 0 : index
    %54 = vector.load %arg9[%c0_29, %c0_30, %c0_31] : memref<1x8x128xf32, #tpu.memory_space<vmem>>, vector<1x8x128xf32>
    %55 = vector.shape_cast %54 : vector<1x8x128xf32> to vector<8x128xf32>
    %56 = vector.shape_cast %53 : vector<8x128xf32> to vector<1x8x128xf32>
    tpu.vector_store %arg9[%c0_29, %c0_30, %c0_31], %56 {strides = array<i32>} : memref<1x8x128xf32, #tpu.memory_space<vmem>>, vector<1x8x128xf32>,
    %c0_32 = arith.constant 0 : index
    %c0_33 = arith.constant 0 : index
    %c0_34 = arith.constant 0 : index
    %57 = vector.load %arg7[%c0_32, %c0_33, %c0_34] : memref<1x8x128xf32, #tpu.memory_space<vmem>>, vector<1x8x128xf32>
    %58 = vector.shape_cast %57 : vector<1x8x128xf32> to vector<8x128xf32>
    %59 = vector.shape_cast %34 : vector<8x128xf32> to vector<1x8x128xf32>
    %cst_35 = arith.constant dense<0.000000e+00> : vector<8x128xf32>
    %60 = vector.multi_reduction <add>, %59, %cst_35 [0] : vector<1x8x128xf32> to vector<8x128xf32>
    %61 = arith.addf %58, %60 : vector<8x128xf32>
    %c0_36 = arith.constant 0 : index
    %c0_37 = arith.constant 0 : index
    %c0_38 = arith.constant 0 : index
    %62 = vector.load %arg7[%c0_36, %c0_37, %c0_38] : memref<1x8x128xf32, #tpu.memory_space<vmem>>, vector<1x8x128xf32>
    %63 = vector.shape_cast %62 : vector<1x8x128xf32> to vector<8x128xf32>
    %64 = vector.shape_cast %61 : vector<8x128xf32> to vector<1x8x128xf32>
    tpu.vector_store %arg7[%c0_36, %c0_37, %c0_38], %64 {strides = array<i32>} : memref<1x8x128xf32, #tpu.memory_space<vmem>>, vector<1x8x128xf32>,
    return
  }
  func.func @transform_0(%arg0: i32, %arg1: i32) -> (i32, i32, i32) {
    %c0_i32 = arith.constant 0 : i32
    %c0_i32_0 = arith.constant 0 : i32
    return %arg0, %arg1, %c0_i32 : i32, i32, i32
  }
  func.func @transform_1(%arg0: i32, %arg1: i32) -> (i32, i32, i32) {
    %c0_i32 = arith.constant 0 : i32
    %c0_i32_0 = arith.constant 0 : i32
    return %arg0, %arg1, %c0_i32 : i32, i32, i32
  }
  func.func @transform_2(%arg0: i32, %arg1: i32) -> (i32, i32, i32) {
    %c0_i32 = arith.constant 0 : i32
    %c0_i32_0 = arith.constant 0 : i32
    return %arg0, %arg1, %c0_i32 : i32, i32, i32
  }
  func.func @transform_3(%arg0: i32, %arg1: i32) -> (i32, i32) {
    %c0_i32 = arith.constant 0 : i32
    %c0_i32_0 = arith.constant 0 : i32
    %c0_i32_1 = arith.constant 0 : i32
    return %c0_i32, %c0_i32_0 : i32, i32
  }
  func.func @transform_4(%arg0: i32, %arg1: i32) -> (i32, i32) {
    %c0_i32 = arith.constant 0 : i32
    %c0_i32_0 = arith.constant 0 : i32
    %c0_i32_1 = arith.constant 0 : i32
    return %c0_i32, %c0_i32_0 : i32, i32
  }
  func.func @transform_5(%arg0: i32, %arg1: i32) -> (i32, i32, i32) {
    %c0_i32 = arith.constant 0 : i32
    %c0_i32_0 = arith.constant 0 : i32
    %c0_i32_1 = arith.constant 0 : i32
    return %arg0, %c0_i32, %c0_i32_0 : i32, i32, i32
  }
  func.func @transform_6(%arg0: i32, %arg1: i32) -> (i32, i32, i32) {
    %c0_i32 = arith.constant 0 : i32
    %c0_i32_0 = arith.constant 0 : i32
    %c0_i32_1 = arith.constant 0 : i32
    return %arg0, %c0_i32, %c0_i32_0 : i32, i32, i32
  }
  func.func @transform_7(%arg0: i32, %arg1: i32) -> (i32, i32, i32) {
    %c0_i32 = arith.constant 0 : i32
    %c0_i32_0 = arith.constant 0 : i32
    %c0_i32_1 = arith.constant 0 : i32
    return %arg0, %c0_i32, %c0_i32_0 : i32, i32, i32
  }
  func.func @transform_8(%arg0: i32, %arg1: i32) -> (i32, i32, i32) {
    %c0_i32 = arith.constant 0 : i32
    %c0_i32_0 = arith.constant 0 : i32
    %c0_i32_1 = arith.constant 0 : i32
    return %arg0, %c0_i32, %c0_i32_0 : i32, i32, i32
  }
}

</mosaic_0001>

<bundles_post_ra>
// kernel: tpu_custom_call.1
= control target key start
LH: loop header
LB: loop body
LE: loop exit
PB: predicated region body
PF: predicated region fallthrough
CT: control target
= control target key end

     0   :  { %s1526_s0 = inlined_call_operand.hbm [shape: f32[2,8,128], index: 0, kind: input, shape index: {}]   ;;  %s1527_s1 = inlined_call_operand.hbm [shape: f32[2,8,128], index: 1, kind: input, shape index: {}]   ;;  %s1528_s2 = inlined_call_operand.hbm [shape: f32[2,8,128], index: 2, kind: input, shape index: {}]   ;;  %s1529_s3 = inlined_call_operand.vmem [shape: f32[1,128], index: 3, kind: input, shape index: {}]   ;;  %s1530_s4 = inlined_call_operand.vmem [shape: f32[1,128], index: 4, kind: input, shape index: {}]   ;;  %s1531_s5 = inlined_call_operand.hbm [shape: f32[2,8,128], index: 5, kind: output, shape index: {0}]   ;;  %s1532_s6 = inlined_call_operand.hbm [shape: f32[2,8,128], index: 6, kind: output, shape index: {1}]   ;;  %s1533_s7 = inlined_call_operand.hbm [shape: f32[2,8,128], index: 7, kind: output, shape index: {2}]   ;;  %s1534_s8 = inlined_call_operand.hbm [shape: f32[2,1,128], index: 8, kind: output, shape index: {3}]  }
   0x1   :  { %1544 = sst [smem:[#allocation25_spill]] %s1527_s1 }
   0x2   :  { %1545 = sst [smem:[#allocation26_spill]] %s1531_s5 }
   0x3   :  { %14 = vsyncpa [#allocation3], 0 }
   0x4   :  { %16 = vsyncpa [#allocation3 + $0x1], 0 }
   0x5   :  { %17 = vsyncpa [#allocation6], 0 }
   0x6   :  { %19 = vsyncpa [#allocation6 + $0x1], 0 }
   0x7   :  { %20 = vsyncpa [#allocation4], 0 }
   0x8   :  { %22 = vsyncpa [#allocation4 + $0x1], 0 }
   0x9   :  { %23 = vsyncpa [#allocation10], 0 }
   0xa   :  { %25 = vsyncpa [#allocation10 + $0x1], 0 }
   0xb   :  { %26 = vsyncpa [#allocation13], 0 }
   0xc   :  { %28 = vsyncpa [#allocation13 + $0x1], 0  ;;  %s1206_s27 = smov 0   ;;  %s1208_s28 = smov 0  }
   0xd   :  { %s1210_s29 = smov 0   ;;  %s1212_s30 = smov 0  }
   0xe   :  { %s1214_s9 = smov 0   ;;  %s1216_s10 = smov 0  }
   0xf LB: > { %1546 = sst [smem:[#allocation19_spill]] %s1132_s27  ;;  %s1237_s11 = sadd.s32 4294967295, %s1152_s10   ;;  %s1152_s10 = sphi %s1216_s10, %s34_s10   ;;  %s1148_s9 = sphi %s1214_s9, %s1568_s9   ;;  %s1144_s30 = sphi %s1212_s30, %s1567_s30   ;;  %s1140_s29 = sphi %s1210_s29, %s1571_s29   ;;  %s1136_s28 = sphi %s1208_s28, %s1570_s28   ;;  %s1132_s27 = sphi %s1206_s27, %s1569_s27  }
  0x10   : > { %1547 = sst [smem:[#allocation20_spill]] %s1148_s9  ;;  %s1535_s12 = sadd.s32 4294967294, %s1152_s10  }
  0x11   : > { %1548 = sst [smem:[#allocation21_spill]] %s1152_s10  ;;  %s46_s13 = sadd.s32 1, %s1148_s9 }
  0x12   : > { %s55_s14 = sadd.s32 1, %s1140_s29  ;;  %p48_p0 = scmp.ge.s32.totalorder %s46_s13, 2 }
  0x13   : > { %p62_p1 = scmp.ne.s32.totalorder %s1140_s29, %s1136_s28  ;;  %p63_p2 = scmp.eq.s32.totalorder %s1152_s10, 0 }
  0x14   : > { %p68_p3 = scmp.ne.s32.totalorder %s1136_s28, %s1132_s27  ;;  %s1573_s13 = smov (%p48_p0, %s46_s13), 0 }
  0x15   : > { %1549 = sst [smem:[#allocation22_spill]] %s1573_s13  ;;  %p1249_p4 = por %p63_p2, %p62_p1 }
  0x16   : > { %p69_p5 = scmp.eq.s32.totalorder %s1237_s11, 0  ;;  %s50_s16 = ssub.s32 %s1148_s9, %s1573_s13 }
  0x17   : > { %p190_p6 = scmp.eq.s32.totalorder %s1237_s11, 1  ;;  %p53_p7 = scmp.eq.s32.totalorder %s50_s16, 0 }
  0x18   : > { %p1257_p8 = por %p69_p5, %p68_p3  ;;  %p196_p10 = scmp.eq.s32.totalorder %s1535_s12, 1 }
  0x19   : > { %p1261_p9 = por %p190_p6, %p62_p1  ;;  %p841_p13 = scmp.lt.s32.totalorder %s1152_s10, 2 }
  0x1a   : > { %s1268_s19 = scalar_select %p53_p7, %s1140_s29, %s55_s14  }
  0x1b   : > { %p1270_p11 = por %p196_p10, %p68_p3  ;;  %s1537_s21 = sand.u32 1, %s1140_s29  }
  0x1c   : > { %1553 = sst [smem:[#allocation23_spill]] %s1268_s19  ;;  %s1279_s22 = sshll.u32 %s1537_s21, 3 }
  0x1d   : > { %s1554_s20 = scalar_select %p1270_p11, 1, 0 }
  0x1e   : > { %s1282_s23 = sshll.u32 %s1148_s9, 7  ;;  %p1286_p0 = pnand %p841_p13, %p1249_p4 }
  0x1f   : > { %1555 = sst [smem:[#allocation24_spill]] %s1554_s20  ;;  %s319_s25 = sand.u32 1, %s1152_s10  }
  0x20   : > { %s1557_s1 = sld [smem:[#allocation25_spill]]  ;;  %s323_s12 = scalar_lea.vmem [#allocation5], %s1279_s22 }
  0x21   : > { %s331_s13 = sshll.u32 %s323_s12, 4  ;;  %p787_p1 = scmp.ge.s32.totalorder %s1152_s10, 1  ;;  %s332_s13 = int_to_ptr.vmem [resolvable:$true] %s331_s13 }
  0x22   : > { %p355_p2 = scmp.lt.s32.totalorder %s1152_s10, 3  ;;  %s1298_s21 = scalar_lea.sflag [#allocation6], %s319_s25 }
  0x23   : > { %p900_p3 = pneg %p1286_p0  ;;  %s911_s15 = scalar_lea.vmem %s332_s13, 128 }
  0x24   : > { %p912_p4 = scmp.ne.s32.totalorder %s332_s13, %s911_s15  ;;  %s1154_s9 = smov [#allocation5]  }
  0x25   : > { %s916_s19 = sshll.u32 %s1154_s9, 4  ;;  %s917_s19 = int_to_ptr.vmem [resolvable:$false] %s916_s19 }
  0x26   : > { %s329_s16 = scalar_lea.hbm %s1557_s1, %s1282_s23  ;;  %p914_p5 = pnand %p912_p4, %p900_p3 }
  0x27   : > { %s918_s26 = scalar_lea.vmem %s917_s19, 256  ;;  %p919_p7 = scmp.lt.s32.totalorder %s332_s13, %s917_s19 }
  0x28   : > { %p915_p6 = pneg %p914_p5  ;;  %p920_p10 = scmp.lt.s32.totalorder %s918_s26, %s911_s15 }
  0x2a   : > { %p921_p13 = por %p920_p10, %p919_p7 }
  0x2c   : > { %p922_p12 = pnand %p921_p13, %p915_p6 }
  0x2e   : > { %925 = shalt.err (!%p922_p12)
}
  0x2f   : > { %824 = dma.hbm_to_vmem [thread:$0]  (!%p1286_p0), %s329_s16, 128, %s332_s13, %s1298_s21  }
  0x30   : > { %p1312_p4 = pnand %p787_p1, %p355_p2  ;;  %s310_s25 = scalar_lea.hbm %s1526_s0, %s1282_s23 }
  0x31   : > { %s304_s14 = scalar_lea.vmem [#allocation2], %s1279_s22  ;;  %s348_s20 = scalar_lea.hbm %s1528_s2, %s1282_s23 }
  0x32   : > { %s312_s15 = sshll.u32 %s304_s14, 4  ;;  %s1559_s27 = sand.u32 1, %s1140_s29   ;;  %s313_s15 = int_to_ptr.vmem [resolvable:$true] %s312_s15 }
  0x33   : > { %s301_s5 = scalar_lea.sflag [#allocation3], %s1559_s27  ;;  %s939_s13 = scalar_lea.vmem %s313_s15, 128 }
  0x34   : > { %p940_p12 = scmp.ne.s32.totalorder %s313_s15, %s939_s13  ;;  %s1155_s16 = smov [#allocation2]  }
  0x35   : > { %s944_s10 = sshll.u32 %s1155_s16, 4  ;;  %s945_s10 = int_to_ptr.vmem [resolvable:$false] %s944_s10 }
  0x36   : > { %p942_p1 = pnand %p940_p12, %p900_p3  ;;  %s946_s12 = scalar_lea.vmem %s945_s10, 256 }
  0x37   : > { %p947_p5 = scmp.lt.s32.totalorder %s313_s15, %s945_s10  ;;  %p948_p6 = scmp.lt.s32.totalorder %s946_s12, %s939_s13 }
  0x38   : > { %p943_p2 = pneg %p942_p1 }
  0x39   : > { %p949_p7 = por %p948_p6, %p947_p5 }
  0x3b   : > { %p950_p10 = pnand %p949_p7, %p943_p2 }
  0x3d   : > { %953 = shalt.err (!%p950_p10)
}
  0x3e   : > { %821 = dma.hbm_to_vmem [thread:$0]  (!%p1286_p0), %s310_s25, 128, %s313_s15, %s301_s5  }
  0x3f   : > { %s342_s1 = scalar_lea.vmem [#allocation7], %s1279_s22  ;;  %s1156_s14 = smov [#allocation7]  }
  0x40   : > { %s350_s27 = sshll.u32 %s342_s1, 4  ;;  %s972_s10 = sshll.u32 %s1156_s14, 4  ;;  %s351_s27 = int_to_ptr.vmem [resolvable:$true] %s350_s27  ;;  %s973_s10 = int_to_ptr.vmem [resolvable:$false] %s972_s10 }
  0x41   : > { %s967_s19 = scalar_lea.vmem %s351_s27, 128  ;;  %s974_s26 = scalar_lea.vmem %s973_s10, 256 }
  0x42   : > { %p968_p13 = scmp.ne.s32.totalorder %s351_s27, %s967_s19  ;;  %p975_p2 = scmp.lt.s32.totalorder %s351_s27, %s973_s10 }
  0x43   : > { %p976_p5 = scmp.lt.s32.totalorder %s974_s26, %s967_s19 }
  0x44   : > { %p970_p12 = pnand %p968_p13, %p900_p3 }
  0x45   : > { %p977_p6 = por %p976_p5, %p975_p2 }
  0x46   : > { %p971_p1 = pneg %p970_p12 }
  0x48   : > { %p978_p7 = pnand %p977_p6, %p971_p1 }
  0x4a   : > { %981 = shalt.err (!%p978_p7)
}
  0x4b   : > { %827 = dma.hbm_to_vmem [thread:$0]  (!%p1286_p0), %s348_s20, 128, %s351_s27, %s1298_s21  }
  0x4c   : > { %359 = sbr.rel (%p1312_p4) target bundleno = 193 (0xc1), region = 40  ;;  %s1347_s25 = sand.u32 (!%p1312_p4), 1, %s1136_s28  }
  0x4d   : > { %s1350_s15 = sshll.u32 (!%p1312_p4), %s1347_s25, 3  ;;  %s362_s24 = scalar_lea.sflag (!%p1312_p4), [#allocation3], %s1347_s25 }
  0x4e   : > { %s365_s13 = scalar_lea.vmem (!%p1312_p4), [#allocation2], %s1350_s15 }
  0x51   : > { %1111 = dma.done.wait (%p1257_p8), %s362_s24, 128  }
  0x52   : > { %1113 = vsyncadd (%p1257_p8), %s362_s24, 4294967168  ;;  %s370_s20 = sand.u32 1, %s1237_s11   ;;  %s374_s23 = scalar_lea.vmem [#allocation5], %s1350_s15 }
  0x53   : > { %s371_s21 = scalar_lea.sflag [#allocation6], %s370_s20 }
  0x54   : > { %1115 = dma.done.wait (%p1257_p8), %s371_s21, 256  }
  0x55   : > { %1117 = vsyncadd (%p1257_p8), %s371_s21, 4294967040  ;;  %v1366_v0 = vld [vmem:[%s365_s13] sm:$0xff]  ;;  %s439_s27 = scalar_lea.vmem [#allocation12], %s1347_s25  ;;  %s801_s19 = sshll.u32 %s1144_s30, 4 }
  0x56   : > { %v460_v1 = vand.u32 2147483647, %v1366_v0  ;;  %v447_v2 = vld [vmem:[%s1529_s3] sm:$0x1]  ;;  %s564_s17 = sshll.u32 %s439_s27, 4  ;;  %s562_s26 = scalar_lea.hbm %s1534_s8, %s801_s19  ;;  %s1377_s17 = int_to_ptr.vmem [resolvable:$true] %s564_s17 }
  0x57   : > { %v448_v3 = vld [vmem:[%s1530_s4] sm:$0x1]  ;;  %s513_s5 = scalar_lea.sflag [#allocation13], %s1347_s25  ;;  %s982_s22 = scalar_lea.vmem %s1377_s17, 16 }
  0x58   : > { %v461_v4 = vsub.f32 0.0, %v460_v1  ;;  %v449_v5 = vsub.f32 %v447_v2, %v448_v3  ;;  %p983_p8 = scmp.ne.s32.totalorder %s1377_s17, %s982_s22  ;;  %s1157_s24 = smov [#allocation12]  }
  0x59   : > { %s986_s13 = sshll.u32 %s1157_s24, 4  ;;  %s987_s13 = int_to_ptr.vmem [resolvable:$false] %s986_s13 }
  0x5a   : > { %v462_v6 = vmul.f32 1.442695, %v461_v4  ;;  %v450_v7 = vand.u32 2147483647, %v449_v5  ;;  %v452_v8 = vmul.f32 %v449_v5, %v449_v5  ;;  %p984_p0 = pnand %p983_p8, %p1261_p9  ;;  %s988_s21 = scalar_lea.vmem %s987_s13, 32 }
  0x5b   : > { %p989_p4 = scmp.lt.s32.totalorder %s1377_s17, %s987_s13  ;;  %p990_p10 = scmp.lt.s32.totalorder %s988_s21, %s982_s22 }
  0x5c   : > { %892 = vpow2.f32 %v462_v6  ;;  %vm451_vm0 = vcmp.lt.f32.partialorder %v450_v7, 0.1  ;;  %v453_v9 = vmul.f32 5.0, %v452_v8  ;;  %v794_v10 = vadd.f32 -0.05, %v450_v7  ;;  %p985_p3 = pneg %p984_p0 }
  0x5d   : > { %p991_p13 = por %p990_p10, %p989_p4 }
  0x5e   : > { %v455_v11 = vsel %vm451_vm0, %v453_v9, %v794_v10 }
  0x5f   : > { %457 = vst [vmem:[%s439_s27] sm:$0x1] %v455_v11  ;;  %p992_p12 = pnand %p991_p13, %p985_p3 }
  0x61   : > { %995 = shalt.err (!%p992_p12)
}
  0x62   : > { %s996_s9 = scalar_lea.hbm %s562_s26, 16  ;;  %s1000_s1 = scalar_lea.hbm %s1534_s8, 32 }
  0x63   : > { %p997_p1 = scmp.ne.s32.totalorder %s562_s26, %s996_s9  ;;  %p1001_p6 = scmp.lt.s32.totalorder %s562_s26, %s1534_s8 }
  0x64   : > { %p1002_p7 = scmp.lt.s32.totalorder %s1000_s1, %s996_s9 }
  0x65   : > { %p998_p2 = pnand %p997_p1, %p1261_p9 }
  0x66   : > { %p1003_p8 = por %p1002_p7, %p1001_p6 }
  0x67   : > { %p999_p5 = pneg %p998_p2 }
  0x69   : > { %p1004_p0 = pnand %p1003_p8, %p999_p5 }
  0x6b   : > { %1007 = shalt.err (!%p1004_p0)
}
  0x6c   : > { %813 = dma.vmem_to_hbm [thread:$0]  (%p1261_p9), %s1377_s17, 16, %s562_s26, %s513_s5   ;;  %v893_v12 = vpop.eup %892  ;;  %v459_v14 = vld [vmem:[%s374_s23] sm:$0xff]  ;;  %vm464_vm1 = vcmp.ge.f32.partialorder %v1366_v0, 0.0  ;;  %v469_v15 = vsub.f32 0.0, %v1366_v0 }
  0x6d   : > { %v466_v13 = vadd.f32 1.0, %v893_v12  ;;  %v465_v16 = vsel %vm464_vm1, 1.0, %v893_v12  ;;  %v476_v17 = vmul.f32 0.5, %v459_v14  ;;  %s383_s14 = scalar_lea.vmem [#allocation7], %s1350_s15  ;;  %v474_v21 = vsub.f32 1.0, %v459_v14  ;;  %s433_s17 = scalar_lea.vmem [#allocation11], %s1350_s15 }
  0x6e   : > { %v480_v19 = vld [vmem:[%s383_s14] sm:$0xff]  ;;  %v470_v20 = vmax.f32 %v469_v15, 0.0  ;;  %s551_s10 = sshll.u32 %s433_s17, 4  ;;  %s798_s23 = sshll.u32 %s1144_s30, 7  ;;  %s1408_s10 = int_to_ptr.vmem [resolvable:$true] %s551_s10 }
  0x6f   : > { %894 = vrcp.f32 %v466_v13  ;;  %v477_v25 = vadd.f32 1.0, %v476_v17  ;;  %v475_v29 = vmul.f32 %v474_v21, %v1366_v0  ;;  %s426_s26 = scalar_lea.vmem [#allocation9], %s1350_s15  ;;  %s419_s22 = scalar_lea.vmem [#allocation8], %s1350_s15 }
  0x70   : > { %896 = vlog2.f32 %v466_v13  ;;  %s538_s5 = sshll.u32 %s426_s26, 4  ;;  %s525_s24 = sshll.u32 %s419_s22, 4  ;;  %s1418_s5 = int_to_ptr.vmem [resolvable:$true] %s538_s5  ;;  %s1430_s24 = int_to_ptr.vmem [resolvable:$true] %s525_s24 }
  0x71   : > { %s1416_s9 = scalar_lea.hbm %s1532_s6, %s798_s23  ;;  %s1423_s12 = scalar_lea.hbm %s1533_s7, %s798_s23 }
  0x72   : > { %s1560_s19 = sld [smem:[#allocation26_spill]]  ;;  %s1434_s13 = scalar_lea.sflag [#allocation10], %s370_s20 }
  0x73   : > { %s1008_s21 = scalar_lea.vmem %s1418_s5, 128  ;;  %s1158_s30 = smov [#allocation9]  }
  0x74   : > { %p1009_p3 = scmp.ne.s32.totalorder %s1418_s5, %s1008_s21  ;;  %s1012_s16 = sshll.u32 %s1158_s30, 4  ;;  %s1013_s16 = int_to_ptr.vmem [resolvable:$false] %s1012_s16 }
  0x75   : > { %p1015_p13 = scmp.lt.s32.totalorder %s1418_s5, %s1013_s16 }
  0x76   : > { %p1010_p4 = pnand %p1009_p3, %p1261_p9 }
  0x78   : > { %s1428_s14 = scalar_lea.hbm %s1560_s19, %s798_s23  ;;  %p1011_p10 = pneg %p1010_p4 }
  0x7c   : > { %v895_v18 = vpop.eup %894 }
  0x7d   : > { %v897_v22 = vpop.eup %896  ;;  %v468_v23 = vmul.f32 %v895_v18, %v465_v16 }
  0x7e   : > { %v472_v24 = vmul.f32 0.6931472, %v897_v22 }
  0x7f   : > { %v482_v26 = vmul.f32 %v480_v19, %v468_v23  ;;  %v488_v27 = vadd.f32 %v468_v23, %v459_v14 }
  0x80   : > { %v473_v28 = vadd.f32 %v472_v24, %v470_v20 }
  0x81   : > { %v483_v30 = vmul.f32 %v482_v26, %v459_v14  ;;  %v489_v31 = vmul.f32 %v488_v27, %v480_v19 }
  0x82   : > { %v478_v32 = vmul.f32 %v477_v25, %v473_v28 }
  0x83   : > { %486 = vst [vmem:[%s426_s26] sm:$0xff] %v483_v30  ;;  %492 = vst [vmem:[%s433_s17] sm:$0xff] %v489_v31  ;;  %s1014_s26 = scalar_lea.vmem %s1013_s16, 256 }
  0x84   : > { %v479_v33 = vadd.f32 %v478_v32, %v475_v29  ;;  %p1016_p12 = scmp.lt.s32.totalorder %s1014_s26, %s1008_s21 }
  0x86   : > { %p1017_p1 = por %p1016_p12, %p1015_p13 }
  0x88   : > { %p1018_p2 = pnand %p1017_p1, %p1011_p10 }
  0x8a   : > { %1021 = shalt.err (!%p1018_p2)
}
  0x8b   : > { %s1022_s11 = scalar_lea.hbm %s1416_s9, 128  ;;  %s1026_s23 = scalar_lea.hbm %s1532_s6, 256 }
  0x8c   : > { %p1023_p5 = scmp.ne.s32.totalorder %s1416_s9, %s1022_s11  ;;  %p1027_p8 = scmp.lt.s32.totalorder %s1416_s9, %s1532_s6 }
  0x8d   : > { %p1028_p0 = scmp.lt.s32.totalorder %s1026_s23, %s1022_s11 }
  0x8e   : > { %p1024_p6 = pnand %p1023_p5, %p1261_p9 }
  0x8f   : > { %p1029_p3 = por %p1028_p0, %p1027_p8 }
  0x90   : > { %p1025_p7 = pneg %p1024_p6 }
  0x92   : > { %p1030_p4 = pnand %p1029_p3, %p1025_p7 }
  0x94   : > { %1033 = shalt.err (!%p1030_p4)
}
  0x95   : > { %811 = dma.vmem_to_hbm [thread:$0]  (%p1261_p9), %s1418_s5, 128, %s1416_s9, %s1434_s13  }
  0x96   : > { %s1034_s21 = scalar_lea.vmem %s1408_s10, 128  ;;  %s1159_s30 = smov [#allocation11]  }
  0x97   : > { %p1035_p10 = scmp.ne.s32.totalorder %s1408_s10, %s1034_s21  ;;  %s1038_s16 = sshll.u32 %s1159_s30, 4  ;;  %s1039_s16 = int_to_ptr.vmem [resolvable:$false] %s1038_s16 }
  0x98   : > { %s1040_s26 = scalar_lea.vmem %s1039_s16, 256  ;;  %p1041_p1 = scmp.lt.s32.totalorder %s1408_s10, %s1039_s16 }
  0x99   : > { %p1036_p13 = pnand %p1035_p10, %p1261_p9  ;;  %p1042_p2 = scmp.lt.s32.totalorder %s1040_s26, %s1034_s21 }
  0x9b   : > { %p1037_p12 = pneg %p1036_p13  ;;  %p1043_p5 = por %p1042_p2, %p1041_p1 }
  0x9d   : > { %p1044_p6 = pnand %p1043_p5, %p1037_p12 }
  0x9f   : > { %1047 = shalt.err (!%p1044_p6)
}
  0xa0   : > { %s1048_s11 = scalar_lea.hbm %s1423_s12, 128  ;;  %s1052_s20 = scalar_lea.hbm %s1533_s7, 256 }
  0xa1   : > { %p1049_p7 = scmp.ne.s32.totalorder %s1423_s12, %s1048_s11  ;;  %p1053_p3 = scmp.lt.s32.totalorder %s1423_s12, %s1533_s7 }
  0xa2   : > { %p1054_p4 = scmp.lt.s32.totalorder %s1052_s20, %s1048_s11 }
  0xa3   : > { %p1050_p8 = pnand %p1049_p7, %p1261_p9 }
  0xa4   : > { %p1055_p10 = por %p1054_p4, %p1053_p3 }
  0xa5   : > { %p1051_p0 = pneg %p1050_p8 }
  0xa7   : > { %p1056_p13 = pnand %p1055_p10, %p1051_p0 }
  0xa9   : > { %1059 = shalt.err (!%p1056_p13)
}
  0xaa   : > { %812 = dma.vmem_to_hbm [thread:$0]  (%p1261_p9), %s1408_s10, 128, %s1423_s12, %s1434_s13   ;;  %496 = vst [vmem:[%s419_s22] sm:$0xff] %v479_v33 }
  0xab   : > { %s498_s1 = scalar_lea.sflag [#allocation4], %s1347_s25  ;;  %s1060_s27 = scalar_lea.vmem %s1430_s24, 128 }
  0xac   : > { %p1061_p12 = scmp.ne.s32.totalorder %s1430_s24, %s1060_s27  ;;  %s1160_s21 = smov [#allocation8]  }
  0xad   : > { %s1064_s30 = sshll.u32 %s1160_s21, 4  ;;  %s1065_s30 = int_to_ptr.vmem [resolvable:$false] %s1064_s30 }
  0xae   : > { %p1062_p1 = pnand %p1061_p12, %p1261_p9  ;;  %s1066_s16 = scalar_lea.vmem %s1065_s30, 256 }
  0xaf   : > { %p1067_p5 = scmp.lt.s32.totalorder %s1430_s24, %s1065_s30  ;;  %p1068_p6 = scmp.lt.s32.totalorder %s1066_s16, %s1060_s27 }
  0xb0   : > { %p1063_p2 = pneg %p1062_p1 }
  0xb1   : > { %p1069_p7 = por %p1068_p6, %p1067_p5 }
  0xb3   : > { %p1070_p8 = pnand %p1069_p7, %p1063_p2 }
  0xb5   : > { %1073 = shalt.err (!%p1070_p8)
}
  0xb6   : > { %s1074_s15 = scalar_lea.hbm %s1428_s14, 128  ;;  %s1078_s22 = scalar_lea.hbm %s1560_s19, 256 }
  0xb7   : > { %p1075_p0 = scmp.ne.s32.totalorder %s1428_s14, %s1074_s15  ;;  %p1079_p10 = scmp.lt.s32.totalorder %s1428_s14, %s1560_s19 }
  0xb8   : > { %p1080_p13 = scmp.lt.s32.totalorder %s1078_s22, %s1074_s15 }
  0xb9   : > { %p1076_p3 = pnand %p1075_p0, %p1261_p9 }
  0xba   : > { %p1081_p12 = por %p1080_p13, %p1079_p10 }
  0xbb   : > { %p1077_p4 = pneg %p1076_p3 }
  0xbd   : > { %p1082_p1 = pnand %p1081_p12, %p1077_p4 }
  0xbf   : > { %1085 = shalt.err (!%p1082_p1)
}
  0xc0   : > { %810 = dma.vmem_to_hbm [thread:$0]  (%p1261_p9), %s1430_s24, 128, %s1428_s14, %s498_s1  }
  0xc1 PF: > { %s1561_s26 = sld [smem:[#allocation19_spill]] }
  0xc2   : > { %s1563_s5 = sld [smem:[#allocation21_spill]] }
  0xc7   : > { %s576_s9 = sand.u32 1, %s1561_s26  }
  0xc8   : > { %p1564_p2 = scmp.ge.s32.totalorder %s1563_s5, 2  ;;  %s577_s20 = scalar_lea.sflag [#allocation4], %s576_s9 }
  0xca   : > { %p829_p5 = pnand %p1564_p2, %p1270_p11 }
  0xcc   : > { %p830_p6 = pneg %p829_p5 }
  0xce   : > { %1119 = dma.done.wait (%p830_p6), %s577_s20, 128  }
  0xcf   : > { %1121 = vsyncadd (%p830_p6), %s577_s20, 4294967168  ;;  %s1565_s17 = sadd.s32 4294967294, %s1563_s5  }
  0xd0   : > { %s585_s23 = sand.u32 1, %s1565_s17  }
  0xd1   : > { %s586_s27 = scalar_lea.sflag [#allocation10], %s585_s23 }
  0xd2   : > { %1123 = dma.done.wait (%p830_p6), %s586_s27, 256  }
  0xd3   : > { %1125 = vsyncadd (%p830_p6), %s586_s27, 4294967040  ;;  %s604_s18 = scalar_lea.sflag [#allocation13], %s576_s9 }
  0xd4   : > { %1127 = dma.done.wait (%p830_p6), %s604_s18, 16  }
  0xd5   : > { %1129 = vsyncadd (%p830_p6), %s604_s18, 4294967280  ;;  %s34_s10 = sadd.s32 1, %s1563_s5   ;;  %s1566_s24 = sld [smem:[#allocation23_spill]] }
  0xd6   : > { %p31_p9 = scmp.ge.s32.totalorder %s34_s10, 4   ;;  %s1567_s30 = sld [smem:[#allocation20_spill]] }
  0xd7   : > { %s1568_s9 = sld [smem:[#allocation22_spill]]  ;;  %s1569_s27 = smov %s1136_s28 }
  0xd8   : > { %s1570_s28 = smov %s1140_s29  ;;  %33 = sbr.rel (!%p31_p9) target bundleno = 15 (0xf), region = 162 }
  0xdb   : > { %s1571_s29 = smov %s1566_s24 }
  0xdd   :  { %608 = vsyncpa [#allocation3], 1 }
  0xde   :  { %610 = vsyncpa [#allocation3 + $0x1], 1 }
  0xdf   :  { %611 = vsyncpa [#allocation6], 1 }
  0xe0   :  { %613 = vsyncpa [#allocation6 + $0x1], 1 }
  0xe1   :  { %614 = vsyncpa [#allocation4], 1 }
  0xe2   :  { %616 = vsyncpa [#allocation4 + $0x1], 1 }
  0xe3   :  { %617 = vsyncpa [#allocation10], 1 }
  0xe4   :  { %619 = vsyncpa [#allocation10 + $0x1], 1 }
  0xe5   :  { %620 = vsyncpa [#allocation13], 1 }
  0xe6   :  { %622 = vsyncpa [#allocation13 + $0x1], 1 }

</bundles_post_ra>
